<compile_context>
chip_gen: v5e
topology: v5e:2x2
jax: 0.10.0
libtpu: 0.0.40
codegen_flags: <defaults>
</compile_context>

<pallas_src>
import functools

import jax
import jax.numpy as jnp
from jax.experimental import pallas as pl
from jax.experimental.pallas import tpu as pltpu


# ----------------------------------------------------------------------------
# Kernel 1: hoisted input projections   pre = x @ [Wzx|Wrx|Wnx] + [bz|br|bn]
# ----------------------------------------------------------------------------
def _pregate_kernel(x_ref, wx_ref, b_ref, out_ref):
    out_ref[...] = (
        jnp.dot(x_ref[...].astype(jnp.bfloat16), wx_ref[...],
                preferred_element_type=jnp.float32)
        + b_ref[...]
    ).astype(out_ref.dtype)


def input_pregates(x2d, wx_bf16, bias_f32, *, row_tile=512):
    """x2d: (N, D) f32, wx_bf16: (D, 3H) bf16, bias_f32: (3H,) -> (N, 3H) f32."""
    N, D = x2d.shape
    F = wx_bf16.shape[1]
    tn = N if N <= row_tile else row_tile
    grid = (pl.cdiv(N, tn),)
    return pl.pallas_call(
        _pregate_kernel,
        out_shape=jax.ShapeDtypeStruct((N, F), jnp.float32),
        grid=grid,
        in_specs=[
            pl.BlockSpec((tn, D), lambda i: (i, 0)),
            pl.BlockSpec((D, F), lambda i: (0, 0)),
            pl.BlockSpec((1, F), lambda i: (0, 0)),
        ],
        out_specs=pl.BlockSpec((tn, F), lambda i: (i, 0)),
        compiler_params=pltpu.CompilerParams(
            dimension_semantics=("parallel",)),
    )(x2d, wx_bf16, bias_f32.reshape(1, F))


# ----------------------------------------------------------------------------
# Kernel 2: time recurrence (whole sequence in one kernel invocation)
# ----------------------------------------------------------------------------
_MAX_UNROLL_STEPS = 64  # fully unroll (static indexing) below this length


def _make_recurrence_kernel(seq_len, hidden, forward):
    H = hidden

    def kernel(pre_ref, whzr_ref, whn_ref, h0_ref, out_ref, hfin_ref):
        def step(t, h):
            # `t` may be a Python int (unrolled path) or a traced int32.
            idx = t if forward else (seq_len - 1) - t
            pre_t = pre_ref[idx]                        # (B, 3H) f32, bias folded
            # fused z/r hidden matmul: (B,H)bf16 @ (H,2H)bf16 -> (B,2H) f32
            zr = jax.nn.sigmoid(
                pre_t[:, : 2 * H]
                + jnp.dot(h.astype(jnp.bfloat16), whzr_ref[...],
                          preferred_element_type=jnp.float32))
            z = zr[:, :H]
            r = zr[:, H:]
            n = jnp.tanh(
                pre_t[:, 2 * H:]
                + jnp.dot((r * h).astype(jnp.bfloat16), whn_ref[...],
                          preferred_element_type=jnp.float32))
            h_new = (1.0 - z) * h + z * n               # f32 elementwise update
            out_ref[idx] = h_new.astype(out_ref.dtype)
            return h_new

        h = h0_ref[...].astype(jnp.float32)
        if seq_len <= _MAX_UNROLL_STEPS:
            # Fully unrolled: static indices, best LLO scheduling visibility.
            for t in range(seq_len):
                h = step(t, h)
        else:
            h = jax.lax.fori_loop(0, seq_len, step, h)
        hfin_ref[...] = h.astype(hfin_ref.dtype)

    return kernel


def gru_recurrence(pre_sbf, wh_zr, wh_n, h0, direction):
    """pre_sbf: (S, B, 3H) f32 pre-gates; returns ((S, B, H) outputs, (B, H))."""
    S, B, F3 = pre_sbf.shape
    H = wh_n.shape[0]
    kernel = _make_recurrence_kernel(S, H, direction == 1)
    return pl.pallas_call(
        kernel,
        out_shape=(jax.ShapeDtypeStruct((S, B, H), jnp.float32),
                   jax.ShapeDtypeStruct((B, H), jnp.float32)),
        grid=(1,),
        in_specs=[
            pl.BlockSpec((S, B, F3), lambda i: (0, 0, 0)),
            pl.BlockSpec((H, 2 * H), lambda i: (0, 0)),
            pl.BlockSpec((H, H), lambda i: (0, 0)),
            pl.BlockSpec((B, H), lambda i: (0, 0)),
        ],
        out_specs=(pl.BlockSpec((S, B, H), lambda i: (0, 0, 0)),
                   pl.BlockSpec((B, H), lambda i: (0, 0))),
        compiler_params=pltpu.CompilerParams(
            dimension_semantics=("arbitrary",)),   # true time recurrence
    )(pre_sbf, wh_zr, wh_n, h0)


# ----------------------------------------------------------------------------
# Parameter packing + module-level wrapper (glue)
# ----------------------------------------------------------------------------
def pack_gru_params(w_update, b_update, w_reset, b_reset, w_new, b_new,
                    dim_input):
    """Gate weights are (D+H, H) (i.e. PyTorch Linear weight transposed),
    biases (H,).  Split into a hoisted input projection and hidden matrices."""
    D = dim_input
    wx = jnp.concatenate([w_update[:D], w_reset[:D], w_new[:D]],
                         axis=1).astype(jnp.bfloat16)              # (D, 3H)
    bias = jnp.concatenate([b_update, b_reset, b_new]).astype(jnp.float32)
    wh_zr = jnp.concatenate([w_update[D:], w_reset[D:]],
                            axis=1).astype(jnp.bfloat16)           # (H, 2H)
    wh_n = w_new[D:].astype(jnp.bfloat16)                          # (H, H)
    return wx, bias, wh_zr, wh_n


def gru_sublayer_forward(input_seq, hidden_state, packed_params, direction=1):
    """input_seq: (B, S, D) f32, hidden_state: (B, H) f32.
    Returns (outputs (B, S, H), final hidden (B, H)) like GRUSubLayer.forward."""
    B, S, D = input_seq.shape
    H = hidden_state.shape[-1]
    wx, bias, wh_zr, wh_n = packed_params

    # (1) one large hoisted input-projection matmul for all timesteps
    pre = input_pregates(input_seq.reshape(B * S, D), wx, bias)    # (B*S, 3H)
    # glue: time-major layout for the recurrence kernel
    pre_sbf = jnp.transpose(pre.reshape(B, S, 3 * H), (1, 0, 2))   # (S, B, 3H)

    # (2) serial recurrence (time loop fused inside one kernel)
    out_sbh, h_final = gru_recurrence(pre_sbf, wh_zr, wh_n,
                                      hidden_state, direction)
    outputs = jnp.transpose(out_sbh, (1, 0, 2))                    # (B, S, H)
    return outputs, h_final


# ----------------------------------------------------------------------------
# Pure-JAX float32 reference (mirrors the PyTorch module exactly)
# ----------------------------------------------------------------------------
def gru_sublayer_reference(x, h0, w_z, b_z, w_r, b_r, w_n, b_n, direction):
    B, S, D = x.shape
    h = h0
    outs = [None] * S
    idxs = range(S) if direction == 1 else range(S - 1, -1, -1)
    for i in idxs:
        comb = jnp.concatenate([x[:, i, :], h], axis=1)
        z = jax.nn.sigmoid(comb @ w_z + b_z)
        r = jax.nn.sigmoid(comb @ w_r + b_r)
        comb_n = jnp.concatenate([x[:, i, :], r * h], axis=1)
        n = jnp.tanh(comb_n @ w_n + b_n)
        h = (1.0 - z) * h + z * n
        outs[i] = h
    return jnp.stack(outs, axis=1), h


# ----------------------------------------------------------------------------
# Demo / self-check
# ----------------------------------------------------------------------------
if __name__ == "__main__":
    B, S, D, H = 2, 8, 16, 32

    key = jax.random.PRNGKey(0)
    kx, kp = jax.random.split(key)
    x = jax.random.normal(kx, (B, S, D), jnp.float32)
    h0 = jnp.zeros((B, H), jnp.float32)          # GRUSubLayer.init_hidden

    def linear(k, fan_in, fan_out):
        kw, kb = jax.random.split(k)
        s = 1.0 / jnp.sqrt(jnp.float32(fan_in))
        W = jax.random.uniform(kw, (fan_in, fan_out), jnp.float32, -s, s)
        b = jax.random.uniform(kb, (fan_out,), jnp.float32, -s, s)
        return W, b

    gk = jax.random.split(kp, 3)
    Wz, bz = linear(gk[0], D + H, H)   # update gate (weight stored transposed)
    Wr, br = linear(gk[1], D + H, H)   # reset gate
    Wn, bn = linear(gk[2], D + H, H)   # new gate

    packed = pack_gru_params(Wz, bz, Wr, br, Wn, bn, D)

    ok = True
    for direction in (1, -1):
        out, h_fin = gru_sublayer_forward(x, h0, packed, direction)
        out, h_fin = jax.block_until_ready((out, h_fin))
        ref_out, ref_h = gru_sublayer_reference(x, h0, Wz, bz, Wr, br, Wn, bn,
                                                direction)
        assert out.shape == (B, S, H) and h_fin.shape == (B, H)
        assert bool(jnp.all(jnp.isfinite(out)))
        assert bool(jnp.all(jnp.isfinite(h_fin)))
        # bf16 matmul operands vs f32 reference -> loose tolerance
        ok &= bool(jnp.allclose(out, ref_out, atol=5e-2))
        ok &= bool(jnp.allclose(h_fin, ref_h, atol=5e-2))
    assert ok, "Pallas GRU output diverged from float32 reference"
    print("KERNEL_OK")
</pallas_src>

<mosaic_0001>
module attributes {stable_mosaic.version = 11 : i64} {
  func.func @_pregate_kernel(%arg0: i32, %arg1: memref<16x16xf32, #tpu.memory_space<vmem>>, %arg2: memref<16x96xbf16, #tpu.memory_space<vmem>>, %arg3: memref<1x96xf32, #tpu.memory_space<vmem>>, %arg4: memref<16x96xf32, #tpu.memory_space<vmem>>) attributes {dimension_semantics = [#tpu.dimension_semantics<parallel>], iteration_bounds = array<i64: 1>, scalar_prefetch = 0 : i64, scratch_operands = 0 : i64, tpu.core_type = #tpu.core_type<tc>, window_params = [{transform_indices = @transform_0, window_bounds = array<i64: 16, 16>}, {pipeline_mode = #tpu.pipeline_mode<synchronous>, transform_indices = @transform_1, window_bounds = array<i64: 16, 96>}, {pipeline_mode = #tpu.pipeline_mode<synchronous>, transform_indices = @transform_2, window_bounds = array<i64: 1, 96>}, {transform_indices = @transform_3, window_bounds = array<i64: 16, 96>}]} {
    %c0 = arith.constant 0 : index
    %c0_0 = arith.constant 0 : index
    %0 = vector.load %arg1[%c0, %c0_0] : memref<16x16xf32, #tpu.memory_space<vmem>>, vector<16x16xf32>
    %1 = arith.truncf %0 : vector<16x16xf32> to vector<16x16xbf16>
    %c0_1 = arith.constant 0 : index
    %c0_2 = arith.constant 0 : index
    %2 = vector.load %arg2[%c0_1, %c0_2] : memref<16x96xbf16, #tpu.memory_space<vmem>>, vector<16x96xbf16>
    %cst = arith.constant dense<0.000000e+00> : vector<16x96xf32>
    %3 = tpu.matmul %1, %2, %cst {dimension_numbers = #tpu.dot_dimension_numbers<[1], [0], [0], [1], [0, 0, 1, 1], [], []>} : vector<16x16xbf16>, vector<16x96xbf16>, vector<16x96xf32> -> vector<16x96xf32>
    %c0_3 = arith.constant 0 : index
    %c0_4 = arith.constant 0 : index
    %4 = vector.load %arg3[%c0_3, %c0_4] : memref<1x96xf32, #tpu.memory_space<vmem>>, vector<1x96xf32>
    %5 = vector.broadcast %4 : vector<1x96xf32> to vector<16x96xf32>
    %6 = arith.addf %3, %5 : vector<16x96xf32>
    %c0_5 = arith.constant 0 : index
    %c0_6 = arith.constant 0 : index
    %7 = vector.load %arg4[%c0_5, %c0_6] : memref<16x96xf32, #tpu.memory_space<vmem>>, vector<16x96xf32>
    tpu.vector_store %arg4[%c0_5, %c0_6], %6 {strides = array<i32>} : memref<16x96xf32, #tpu.memory_space<vmem>>, vector<16x96xf32>,
    return
  }
  func.func @transform_0(%arg0: i32) -> (i32, i32) {
    %c0_i32 = arith.constant 0 : i32
    %c0_i32_0 = arith.constant 0 : i32
    return %arg0, %c0_i32 : i32, i32
  }
  func.func @transform_1(%arg0: i32) -> (i32, i32) {
    %c0_i32 = arith.constant 0 : i32
    %c0_i32_0 = arith.constant 0 : i32
    %c0_i32_1 = arith.constant 0 : i32
    return %c0_i32, %c0_i32_0 : i32, i32
  }
  func.func @transform_2(%arg0: i32) -> (i32, i32) {
    %c0_i32 = arith.constant 0 : i32
    %c0_i32_0 = arith.constant 0 : i32
    %c0_i32_1 = arith.constant 0 : i32
    return %c0_i32, %c0_i32_0 : i32, i32
  }
  func.func @transform_3(%arg0: i32) -> (i32, i32) {
    %c0_i32 = arith.constant 0 : i32
    %c0_i32_0 = arith.constant 0 : i32
    return %arg0, %c0_i32 : i32, i32
  }
}

</mosaic_0001>

<bundles_post_ra>
// kernel: tpu_custom_call.1
= control target key start
LH: loop header
LB: loop body
LE: loop exit
PB: predicated region body
PF: predicated region fallthrough
CT: control target
= control target key end

     0   :  { %8 = vsyncpa [#allocation3], 0  ;;  %s241_s0 = inlined_call_operand.hbm [shape: f32[16,16], index: 0, kind: input, shape index: {}]   ;;  %s242_s1 = inlined_call_operand.hbm [shape: bf16[16,96], index: 1, kind: input, shape index: {}]   ;;  %s243_s2 = inlined_call_operand.vmem [shape: f32[1,96], index: 2, kind: input, shape index: {}]   ;;  %s244_s3 = inlined_call_operand.hbm [shape: f32[16,96], index: 3, kind: output, shape index: {}]  }
   0x1   :  { %9 = vsyncpa [#allocation6], 0 }
   0x2   :  { %10 = vsyncpa [#allocation4], 0  ;;  %s15_s14 = sshll.u32 %s241_s0, 4  ;;  %s196_s15 = smov [#allocation2]   ;;  %s16_s14 = int_to_ptr.hbm [resolvable:$true] %s15_s14 }
   0x3   :  { %s17_s16 = sshll.u32 %s196_s15, 4  ;;  %s28_s19 = sshll.u32 %s242_s1, 4  ;;  %s18_s16 = int_to_ptr.vmem [resolvable:$true] %s17_s16  ;;  %s29_s19 = int_to_ptr.hbm [resolvable:$true] %s28_s19 }
   0x4   :  { %s197_s20 = smov 128   ;;  %s198_s21 = smov 8  }
   0x5   :  { %23 = dma.hbm_to_vmem [thread:$0]  %s16_s14, 256, %s18_s16, [#allocation3], %s197_s20, %s197_s20, %s198_s21  }
   0x6   :  { %s199_s22 = smov [#allocation5]   ;;  %s200_s24 = smov 64  }
   0x7   :  { %s30_s23 = sshll.u32 %s199_s22, 4  ;;  %s201_s0 = smov 4   ;;  %s31_s23 = int_to_ptr.vmem [resolvable:$true] %s30_s23 }
   0x8   :  { %36 = dma.hbm_to_vmem [thread:$0]  %s29_s19, 128, %s31_s23, [#allocation6], %s200_s24, %s200_s24, %s201_s0  }
   0x9   :  { %190 = dma.done.wait [#allocation3], 256  }
   0xa   :  { %191 = vsyncadd [#allocation3], 4294967040 }
   0xb   :  { %192 = dma.done.wait [#allocation6], 128  }
   0xc   :  { %193 = vsyncadd [#allocation6], 4294967168  ;;  %v109_v0 = vld [vmem:[#allocation5] sm:$0xff]  ;;  %v48_v1 = vld [vmem:[#allocation2] sm:$0xff]  ;;  %vm63_vm0 = vcmask 130048   ;;  %vm81_vm1 = vcmask 785408  }
   0xd   :  { %v49_v2 = vld [vmem:[#allocation2 + $0x8] sm:$0xff]  ;;  %74 = vmatpush.bf16.msra.mxu0 %v109_v0  ;;  %v117_v4 = vld [vmem:[%s243_s2] ss:$0 sm:$0xff]  ;;  %s202_s26 = smov [#allocation7]   ;;  %s90_s30 = sshll.u32 %s244_s3, 4  ;;  %s91_s30 = int_to_ptr.hbm [resolvable:$true] %s90_s30 }
   0xe   :  { %v50_v3 = vpack.c.bf16 %v49_v2, %v48_v1  ;;  %s88_s27 = sshll.u32 %s202_s26, 4  ;;  %s89_s27 = int_to_ptr.vmem [resolvable:$true] %s88_s27 }
  0x10   :  { %108 = vmatmul.msk.bf16.vlgmr.msra.gmra.mxu0 %vm63_vm0, %v50_v3 }
  0x8d   :  { %v76_v5 = vpop.f32.mrf.mxu0 }
  0x8e   :  { %v77_v6 = vadd.f32 %v117_v4, %v76_v5 }
  0x90   :  { %82 = vst.msk [vmem:[#allocation7] sm:$0xff] %vm81_vm1, %v77_v6 }
  0x95   :  { %v78_v7 = vpop.f32.mrf.mxu0 }
  0x96   :  { %v79_v8 = vadd.f32 %v117_v4, %v78_v7 }
  0x98   :  { %83 = vst.msk [vmem:[#allocation7 + $0x8] sm:$0xff] %vm81_vm1, %v79_v8 }
  0x99   :  { %96 = dma.vmem_to_hbm [thread:$0]  %s89_s27, 256, %s91_s30, [#allocation4], %s197_s20, %s197_s20, %s198_s21  }
  0x9a   :  { %194 = dma.done.wait [#allocation4], 256  }
  0x9b   :  { %195 = vsyncadd [#allocation4], 4294967040 }
  0x9c   :  { %101 = vsyncpa [#allocation3], 1 }
  0x9d   :  { %102 = vsyncpa [#allocation6], 1 }
  0x9e   :  { %103 = vsyncpa [#allocation4], 1 }

</bundles_post_ra>
